<compile_context>
chip_gen: v7x
topology: tpu7x:2x2x1
jax: 0.10.0
libtpu: 0.0.40
codegen_flags: <defaults>
</compile_context>

<pallas_src>
import jax
import jax.numpy as jnp
from jax.experimental import pallas as pl
from jax.experimental.pallas import tpu as pltpu


def _flatten_dma_kernel(x_hbm, o_hbm, sem):
    # One async copy straight from the input HBM buffer to the output HBM
    # buffer. No VMEM staging, no vld/vst/VPU bundle work.
    cp = pltpu.make_async_copy(x_hbm, o_hbm, sem)
    cp.start()
    cp.wait()


def flatten_forward(x, use_pallas_copy=True):
    """x: (N, d1, d2, ...) -> (N, prod(d_i)); same dtype/values (row-major view)."""
    n = x.shape[0]
    m = 1
    for d in x.shape[1:]:
        m *= d
    # Metadata-only reshape (== torch .view semantics); zero data movement.
    x2 = x.reshape(n, m)

    if not use_pallas_copy:
        # Preferred production path: flatten is free, no kernel needed.
        return x2

    return pl.pallas_call(
        _flatten_dma_kernel,
        out_shape=jax.ShapeDtypeStruct((n, m), x.dtype),
        # Raw HBM refs in/out: grid=() (no pipeline / grid-step overhead),
        # single full-buffer DMA, scales to any size on v5e / v6e / v7x.
        in_specs=[pl.BlockSpec(memory_space=pl.ANY)],
        out_specs=pl.BlockSpec(memory_space=pl.ANY),
        scratch_shapes=[pltpu.SemaphoreType.DMA(())],
    )(x2)


if __name__ == "__main__":
    key = jax.random.PRNGKey(0)
    # Module implies (n, m, 1, 1) inputs; small deterministic example.
    x = jax.random.normal(key, (2, 32, 1, 1), dtype=jnp.float32)

    out = flatten_forward(x)
    out = jax.block_until_ready(out)

    # Reference check against plain reshape (== torch .view semantics).
    ref = x.reshape(x.shape[0], -1)
    assert out.shape == (2, 32), out.shape
    assert out.dtype == x.dtype
    assert jnp.array_equal(out, ref)

    # Also exercise the zero-copy (no-kernel) fast path.
    out2 = jax.block_until_ready(flatten_forward(x, use_pallas_copy=False))
    assert jnp.array_equal(out2, ref)

    print("KERNEL_OK")
</pallas_src>

<mosaic_0001>
module attributes {stable_mosaic.version = 11 : i64} {
  func.func @_flatten_dma_kernel(%arg0: memref<2x32xf32, #tpu.memory_space<any>>, %arg1: memref<2x32xf32, #tpu.memory_space<any>>, %arg2: memref<!tpu.dma_semaphore, #tpu.memory_space<semaphore_mem>>) attributes {dimension_semantics = [], scalar_prefetch = 0 : i64, scratch_operands = 1 : i64, tpu.core_type = #tpu.core_type<tc>} {
    tpu.enqueue_dma source(%arg0 : memref<2x32xf32, #tpu.memory_space<any>>) target(%arg1 : memref<2x32xf32, #tpu.memory_space<any>>) target_semaphore(%arg2 : memref<!tpu.dma_semaphore, #tpu.memory_space<semaphore_mem>>)
    tpu.wait_dma2 semaphore(%arg2 : memref<!tpu.dma_semaphore, #tpu.memory_space<semaphore_mem>>) src(%arg0 : memref<2x32xf32, #tpu.memory_space<any>>) dst(%arg1 : memref<2x32xf32, #tpu.memory_space<any>>)
    return
  }
}

</mosaic_0001>

<bundles_post_ra>
// kernel: tpu_custom_call.1
= control target key start
LH: loop header
LB: loop body
LE: loop exit
PB: predicated region body
PF: predicated region fallthrough
CT: control target
= control target key end

     0   :  { %s34_s6 = smov [#allocation2]   ;;  %s35_s7 = smov [#allocation3]   ;;  %s53_s0 = inlined_call_operand.hbm [shape: f32[2,32], index: 0, kind: input, shape index: {}]   ;;  %s54_s1 = inlined_call_operand.hbm [shape: f32[2,32], index: 1, kind: output, shape index: {}]  }
   0x1   :  { %s36_s8 = smov 0  }
   0x2   :  { %18 = dma.general %s53_s0, 32, %s54_s1, %s34_s6, %s35_s7, [#allocation4], %s36_s8, 0  }
   0x3   :  { %32 = dma.done.wait [#allocation2], 32 }
   0x4   :  { %33 = vsyncadd [#allocation2], 4294967264 }
   0x5   :  { %22 = vsyncmov [#allocation2] }
   0x8   :  { %s23_s13 = vpop.sfrf %22 }
   0x9   :  { %p28_p0 = scmp.ne.s32.totalorder %s23_s13, 0 }
   0xb   :  { %27 = shalt.err (%p28_p0)  }

</bundles_post_ra>
